<compile_context>
chip_gen: v7x
topology: tpu7x:2x2x1
jax: 0.10.0
libtpu: 0.0.40
codegen_flags: <defaults>
</compile_context>

<pallas_src>
import math
from functools import lru_cache

import jax
import jax.numpy as jnp
from jax.experimental import pallas as pl
from jax.experimental.pallas import tpu as pltpu

_TWO_PI = 2.0 * math.pi


def _pos_emb_kernel(x_ref, w_ref, o_ref):
    """x_ref: (1, tb) f32, w_ref: (half, 1) f32, o_ref: (2*half + 1, tb) f32.

    Transposed layout: batch runs along the 128-lane axis, so the single
    `o_ref[...] = ...` below is a dense, unmasked store.
    """
    x = x_ref[...]                                   # (1, tb)    lane-dense
    freqs = w_ref[...] * (x * _TWO_PI)               # (half, tb) via broadcast
    o_ref[...] = jnp.concatenate(
        [x, jnp.sin(freqs), jnp.cos(freqs)], axis=0  # (2*half + 1, tb)
    )


@lru_cache(maxsize=None)
def _pos_emb_call(Bp, tb, half):
    dim_out = 2 * half + 1
    grid_steps = Bp // tb
    compiler_params = None
    if grid_steps > 1:
        # Only worth sharding across TensorCores when there is real work per core.
        compiler_params = pltpu.CompilerParams(dimension_semantics=("parallel",))
    return pl.pallas_call(
        _pos_emb_kernel,
        out_shape=jax.ShapeDtypeStruct((dim_out, Bp), jnp.float32),
        grid=(grid_steps,),
        in_specs=[
            pl.BlockSpec((1, tb), lambda i: (0, i)),      # x, lane-major batch tile
            pl.BlockSpec((half, 1), lambda i: (0, 0)),    # weights, resident/shared
        ],
        out_specs=pl.BlockSpec((dim_out, tb), lambda i: (0, i)),
        compiler_params=compiler_params,
    )


def random_or_learned_sinusoidal_pos_emb(x, weights):
    """x: (B,) float, weights: (half_dim,) float -> (B, 2*half_dim + 1) f32."""
    B = x.shape[0]
    half = weights.shape[0]

    # Batch tile: single grid step whenever possible, otherwise big (8192) tiles.
    # Batch is padded to a multiple of 128 so the lane axis is fully dense.
    max_tb = 8192
    if B <= max_tb:
        tb = max(128, ((B + 127) // 128) * 128)
        Bp = tb
    else:
        tb = max_tb
        Bp = ((B + tb - 1) // tb) * tb

    xp = jnp.pad(x.astype(jnp.float32), (0, Bp - B)).reshape(1, Bp)
    w2 = weights.astype(jnp.float32).reshape(half, 1)

    out_t = _pos_emb_call(Bp, tb, half)(xp, w2)       # (dim_out, Bp), lane-dense
    return out_t.T[:B]                                # (B, dim_out)


# ----------------------------------------------------------------------------
# main
# ----------------------------------------------------------------------------

if __name__ == "__main__":
    key = jax.random.PRNGKey(0)
    wkey, tkey = jax.random.split(key, 2)

    # Module config consistent with the UNet usage: dim=16 (must be even);
    # is_random / learned only changes requires_grad, not the forward math.
    dim = 16
    half_dim = dim // 2
    batch = 2

    weights = jax.random.normal(wkey, (half_dim,), jnp.float32)   # nn.Parameter
    # Modest timestep magnitudes keep f32 sin/cos range-reduction differences
    # between Mosaic and XLA well below the test tolerance.
    time = jax.random.uniform(tkey, (batch,), jnp.float32) * 8.0

    out = random_or_learned_sinusoidal_pos_emb(time, weights)
    out = jax.block_until_ready(out)

    # Pure-JAX reference (mirrors the PyTorch forward exactly).
    f_ref = time[:, None] * weights[None, :] * _TWO_PI
    ref = jnp.concatenate([time[:, None], jnp.sin(f_ref), jnp.cos(f_ref)], axis=-1)

    assert out.shape == (batch, dim + 1), out.shape
    assert bool(jnp.all(jnp.isfinite(out)))
    assert bool(jnp.allclose(out, ref, atol=1e-4, rtol=1e-4)), \
        float(jnp.max(jnp.abs(out - ref)))
    print("KERNEL_OK")
</pallas_src>

<mosaic_0001>
module attributes {stable_mosaic.version = 11 : i64} {
  func.func @_pos_emb_kernel(%arg0: i32, %arg1: memref<1x128xf32, #tpu.memory_space<vmem>>, %arg2: memref<8x1xf32, #tpu.memory_space<vmem>>, %arg3: memref<17x128xf32, #tpu.memory_space<vmem>>) attributes {dimension_semantics = [#tpu.dimension_semantics<arbitrary>], iteration_bounds = array<i64: 1>, scalar_prefetch = 0 : i64, scratch_operands = 0 : i64, tpu.core_type = #tpu.core_type<tc>, window_params = [{transform_indices = @transform_0, window_bounds = array<i64: 1, 128>}, {pipeline_mode = #tpu.pipeline_mode<synchronous>, transform_indices = @transform_1, window_bounds = array<i64: 8, 1>}, {transform_indices = @transform_2, window_bounds = array<i64: 17, 128>}]} {
    %c0 = arith.constant 0 : index
    %c0_0 = arith.constant 0 : index
    %0 = vector.load %arg1[%c0, %c0_0] : memref<1x128xf32, #tpu.memory_space<vmem>>, vector<1x128xf32>
    %c0_1 = arith.constant 0 : index
    %c0_2 = arith.constant 0 : index
    %1 = vector.load %arg2[%c0_1, %c0_2] : memref<8x1xf32, #tpu.memory_space<vmem>>, vector<8x1xf32>
    %cst = arith.constant 6.28318548 : f32
    %2 = vector.broadcast %cst : f32 to vector<1x128xf32>
    %3 = arith.mulf %0, %2 : vector<1x128xf32>
    %4 = vector.broadcast %1 : vector<8x1xf32> to vector<8x128xf32>
    %5 = vector.broadcast %3 : vector<1x128xf32> to vector<8x128xf32>
    %6 = arith.mulf %4, %5 : vector<8x128xf32>
    %7 = math.sin %6 : vector<8x128xf32>
    %8 = math.cos %6 : vector<8x128xf32>
    %9 = tpu.concatenate %0, %7, %8 in 0 : vector<1x128xf32>, vector<8x128xf32>, vector<8x128xf32> -> vector<17x128xf32>
    %c0_3 = arith.constant 0 : index
    %c0_4 = arith.constant 0 : index
    %10 = vector.load %arg3[%c0_3, %c0_4] : memref<17x128xf32, #tpu.memory_space<vmem>>, vector<17x128xf32>
    tpu.vector_store %arg3[%c0_3, %c0_4], %9 {strides = array<i32>} : memref<17x128xf32, #tpu.memory_space<vmem>>, vector<17x128xf32>,
    return
  }
  func.func @transform_0(%arg0: i32) -> (i32, i32) {
    %c0_i32 = arith.constant 0 : i32
    %c0_i32_0 = arith.constant 0 : i32
    return %c0_i32, %arg0 : i32, i32
  }
  func.func @transform_1(%arg0: i32) -> (i32, i32) {
    %c0_i32 = arith.constant 0 : i32
    %c0_i32_0 = arith.constant 0 : i32
    %c0_i32_1 = arith.constant 0 : i32
    return %c0_i32, %c0_i32_0 : i32, i32
  }
  func.func @transform_2(%arg0: i32) -> (i32, i32) {
    %c0_i32 = arith.constant 0 : i32
    %c0_i32_0 = arith.constant 0 : i32
    return %c0_i32, %arg0 : i32, i32
  }
}

</mosaic_0001>

<bundles_post_ra>
// kernel: tpu_custom_call.1
= control target key start
LH: loop header
LB: loop body
LE: loop exit
PB: predicated region body
PF: predicated region fallthrough
CT: control target
= control target key end

     0   :  { %v313_v1 = vmov 0   ;;  %s381_s0 = inlined_call_operand.vmem [shape: f32[1,128], index: 0, kind: input, shape index: {}]   ;;  %s382_s1 = inlined_call_operand.vmem [shape: f32[8,1], index: 1, kind: input, shape index: {}]   ;;  %s383_s2 = inlined_call_operand.hbm [shape: f32[17,128], index: 2, kind: output, shape index: {}]  }
   0x1   :  { %v13_v0 = vld [vmem:[%s382_s1] sm:$0xff]  ;;  %284 = vset.pattern.permute.xlu0 %v313_v1 }
   0x2   :  { %17 = vperm.xlu0 %284, %v13_v0  }
   0x3   :  { %7 = vsyncpa [#allocation3], 0  ;;  %v21_v2 = vlaneseq  ;;  %v344_v4 = vld [vmem:[%s381_s0] sm:$0x1]  ;;  %v314_v20 = vmov 683565275  }
   0x4   :  { %v14_v6 = vmul.f32 6.2831855, %v344_v4  ;;  %v315_v22 = vmov 2475754826   ;;  %v316_v25 = vmov 2131351028  }
   0x5   :  { %v22_v3 = vshrl.u32 %v21_v2, 7  ;;  %v317_v28 = vmov 2102212464   ;;  %v318_v31 = vmov 920167782   ;;  %s320_s0 = smov [#allocation2]  }
   0x6   :  { %v319_v34 = vmov 1326507024   ;;  %s251_s1 = sshll.u32 %s320_s0, 4  ;;  %s252_s1 = int_to_ptr.vmem [resolvable:$true] %s251_s1 }
   0x7   :  { %v23_v5 = vsub.s32 0, %v22_v3  ;;  %s289_s13 = scalar_lea.vmem %s252_s1, 384  ;;  %p294_p1 = scmp.lt.s32.totalorder %s252_s1, %s252_s1 }
   0x8   :  { %p290_p0 = scmp.ne.s32.totalorder %s252_s1, %s289_s13  ;;  %p295_p2 = scmp.lt.s32.totalorder %s289_s13, %s289_s13 }
   0x9   :  { %v24_v7 = vrot.slane %v14_v6, %v23_v5 }
   0xa   :  { %p296_p3 = por %p295_p2, %p294_p1 }
   0xc   :  { %p297_p4 = pnand %p296_p3, %p290_p0 }
  0x81   :  { %v18_v8 = vpop.permute.xlu0 %17 }
  0x82   :  { %v347_v9 = vmul.f32 %v24_v7, %v18_v8 }
  0x84   :  { %v30_v10 = vand.u32 2139095040, %v347_v9  ;;  %v27_v14 = vand.u32 2147483647, %v347_v9  ;;  %vm29_vm7 = vcmp.lt.s32.totalorder %v347_v9, 0  ;;  %vm119_vm15 = vweird.f32 %v347_v9 }
  0x86   :  { %v31_v11 = vshrl.u32 %v30_v10, 23  ;;  %v34_v17 = vand.u32 8388607, %v27_v14  ;;  %vm28_vm8 = vcmp.le.f32.partialorder %v27_v14, 0.7853982 }
  0x88   :  { %v262_v12 = vadd.s32 4294967169, %v31_v11  ;;  %v35_v36 = vor.u32 8388608, %v34_v17 }
  0x8a   :  { %v37_v13 = vadd.s32 1, %v262_v12  ;;  %v75_v50 = vshll.u32 %v35_v36, 8 }
  0x8c   :  { %vm38_vm0 = vcmp.gt.s32.totalorder %v37_v13, 0 }
  0x8d   :  { %v39_v15 = vsel %vm38_vm0, %v37_v13, 0  ;;  %vm240_vm0 = vcmask 1040384  }
  0x8e   :  { %v41_v16 = vand.u32 31, %v39_v15  ;;  %v40_v19 = vshrl.u32 %v39_v15, 5 }
  0x90   :  { %v42_v18 = vsub.s32 32, %v41_v16  ;;  %v44_v21 = vshll.u32 %v314_v20, %v41_v16  ;;  %v47_v23 = vshll.u32 %v315_v22, %v41_v16  ;;  %v50_v27 = vshll.u32 %v316_v25, %v41_v16 }
  0x91   :  { %v53_v30 = vshll.u32 %v317_v28, %v41_v16  ;;  %v56_v33 = vshll.u32 %v318_v31, %v41_v16  ;;  %vm59_vm1 = vcmp.lt.s32.totalorder %v40_v19, 1  ;;  %vm62_vm2 = vcmp.lt.s32.totalorder %v40_v19, 4 }
  0x92   :  { %v45_v24 = vshrl.u32 %v315_v22, %v42_v18  ;;  %v48_v26 = vshrl.u32 %v316_v25, %v42_v18  ;;  %v51_v29 = vshrl.u32 %v317_v28, %v42_v18  ;;  %v54_v32 = vshrl.u32 %v318_v31, %v42_v18 }
  0x93   :  { %v57_v35 = vshrl.u32 %v319_v34, %v42_v18  ;;  %v43_v45 = vshrl.u32 %v314_v20, %v42_v18  ;;  %vm61_vm3 = vcmp.lt.s32.totalorder %v40_v19, 3  ;;  %vm60_vm4 = vcmp.lt.s32.totalorder %v40_v19, 2 }
  0x94   :  { %v46_v37 = vor.u32 %v45_v24, %v44_v21  ;;  %v49_v38 = vor.u32 %v48_v26, %v47_v23  ;;  %v52_v39 = vor.u32 %v51_v29, %v50_v27  ;;  %v55_v40 = vor.u32 %v54_v32, %v53_v30 }
  0x95   :  { %v58_v41 = vor.u32 %v57_v35, %v56_v33 }
  0x96   :  { %v64_v42 = vsel %vm62_vm2, %v52_v39, 2102212464  ;;  %v67_v43 = vsel %vm59_vm1, %v46_v37, %v49_v38  ;;  %v71_v44 = vsel %vm59_vm1, %v49_v38, %v52_v39  ;;  %v68_v46 = vsel %vm62_vm2, %v55_v40, 920167782 }
  0x97   :  { %v72_v47 = vsel %vm62_vm2, %v58_v41, 1326507024  ;;  %v69_v48 = vsel %vm61_vm3, %v52_v39, %v68_v46  ;;  %v63_v51 = vsel %vm59_vm1, %v43_v45, %v46_v37  ;;  %v65_v52 = vsel %vm61_vm3, %v49_v38, %v64_v42 }
  0x98   :  { %v73_v49 = vsel %vm61_vm3, %v55_v40, %v72_v47  ;;  %v70_v53 = vsel %vm60_vm4, %v67_v43, %v69_v48  ;;  %v66_v59 = vsel %vm60_vm4, %v63_v51, %v65_v52 }
  0x99   :  { %v74_v54 = vsel %vm60_vm4, %v71_v44, %v73_v49  ;;  %v356_v57 = vmul.u32.u64.low %v75_v50, %v70_v53  ;;  %v357_v58 = vmul.u32.u64.high %v75_v50, %v70_v53, %v356_v57  ;;  %v82_v61 = vmul.u32 %v75_v50, %v66_v59 }
  0x9a   :  { %v353_v55 = vmul.u32.u64.low %v75_v50, %v74_v54  ;;  %v354_v56 = vmul.u32.u64.high %v75_v50, %v74_v54, %v353_v55 }
  0x9b   :  { %v85_v60 = vadd.s32 1, %v357_v58 }
  0x9c   :  { %vm84_vm5 = vc.u32 %v354_v56, %v356_v57  ;;  %v83_v11 = vadd.s32 %v356_v57, %v354_v56 }
  0x9d   :  { %v86_v62 = vsel %vm84_vm5, %v85_v60, %v357_v58 }
  0x9e   :  { %v87_v63 = vadd.s32 %v86_v62, %v82_v61 }
  0xa0   :  { %v88_v0 = vadd.s32 536870912, %v87_v63 }
  0xa2   :  { %v89_v1 = vshrl.u32 %v88_v0, 30 }
  0xa4   :  { %v90_v2 = vshll.u32 %v89_v1, 30  ;;  %v113_v24 = vsub.s32 4, %v89_v1 }
  0xa6   :  { %v91_v3 = vsub.s32 %v87_v63, %v90_v2  ;;  %v114_v27 = vsel %vm29_vm7, %v113_v24, %v89_v1 }
  0xa7   :  { %v116_v29 = vsel %vm28_vm8, 0, %v114_v27 }
  0xa8   :  { %v93_v5 = vsub.s32 0, %v91_v3  ;;  %v120_v30 = vadd.s32 3, %v116_v29  ;;  %v224_v32 = vand.u32 3, %v116_v29 }
  0xaa   :  { %v263_v6 = vmin.u32 %v93_v5, %v91_v3  ;;  %v121_v31 = vand.u32 3, %v120_v30  ;;  %vm229_vm10 = vcmp.eq.s32.totalorder %v224_v32, 2  ;;  %vm226_vm12 = vcmp.eq.s32.totalorder %v224_v32, 0 }
  0xab   :  { %vm225_vm14 = vcmp.lt.s32.totalorder %v224_v32, 2 }
  0xac   :  { %v95_v7 = vclz %v263_v6  ;;  %vm126_vm9 = vcmp.eq.s32.totalorder %v121_v31, 2  ;;  %vm123_vm11 = vcmp.eq.s32.totalorder %v121_v31, 0  ;;  %vm122_vm13 = vcmp.lt.s32.totalorder %v121_v31, 2 }
  0xae   :  { %v264_v8 = vadd.s32 4294967294, %v95_v7 }
  0xb0   :  { %vm265_vm6 = vcmp.lt.s32.totalorder %v264_v8, 0 }
  0xb1   :  { %v98_v10 = vsel %vm265_vm6, 0, %v264_v8 }
  0xb2   :  { %v99_v12 = vsub.s32 32, %v98_v10  ;;  %v103_v13 = vsub.s32 4294967266, %v98_v10  ;;  %v100_v15 = vshll.u32 %v91_v3, %v98_v10 }
  0xb4   :  { %v101_v16 = vshrl.u32 %v83_v11, %v99_v12  ;;  %v104_v17 = vadd.s32 127, %v103_v13 }
  0xb6   :  { %v102_v18 = vor.u32 %v101_v16, %v100_v15  ;;  %v105_v19 = vshll.u32 %v104_v17, 23 }
  0xb8   :  { %v106_v20 = vor.u32 4788187, %v105_v19  ;;  %v109_v22 = vcvt.s32.f32 %v102_v18 }
  0xba   :  { %v107_v21 = vand.u32 2147483647, %v106_v20 }
  0xbc   :  { %v110_v23 = vmul.f32 %v109_v22, %v107_v21 }
  0xbe   :  { %v111_v25 = vxor.u32 2147483648, %v110_v23 }
  0xc0   :  { %v112_v26 = vsel %vm29_vm7, %v111_v25, %v110_v23 }
  0xc1   :  { %v115_v28 = vsel %vm28_vm8, %v347_v9, %v112_v26 }
  0xc2   :  { %285 = vcosq.f32 %v115_v28 }
  0xc3   :  { %287 = vsinq.f32 %v115_v28 }
  0xcc   :  { %v286_v33 = vpop.eup %285 }
  0xcd   :  { %v288_v34 = vpop.eup %287  ;;  %v127_v35 = vxor.u32 2147483648, %v286_v33 }
  0xce   :  { %v124_v36 = vxor.u32 2147483648, %v288_v34 }
  0xcf   :  { %v128_v37 = vsel %vm126_vm9, %v127_v35, %v288_v34  ;;  %v231_v14 = vsel %vm229_vm10, %v127_v35, %v288_v34 }
  0xd0   :  { %v125_v38 = vsel %vm123_vm11, %v286_v33, %v124_v36  ;;  %v228_v39 = vsel %vm226_vm12, %v286_v33, %v124_v36 }
  0xd1   :  { %v129_v40 = vsel %vm122_vm13, %v125_v38, %v128_v37  ;;  %v232_v41 = vsel %vm225_vm14, %v228_v39, %v231_v14 }
  0xd2   :  { %v130_v42 = vsel %vm119_vm15, nan, %v129_v40  ;;  %v233_v43 = vsel %vm119_vm15, nan, %v232_v41 }
  0xd3   :  { %v235_v44 = vrot.slane %v130_v42, 7  ;;  %v238_v45 = vrot.slane %v233_v43, 7 }
  0xd5   :  { %v241_v46 = vsel %vm240_vm0, %v344_v4, %v235_v44  ;;  %v242_v47 = vsel %vm240_vm0, %v235_v44, %v238_v45  ;;  %245 = vst [vmem:[#allocation2 + $0x10] sm:$0x1] %v238_v45 }
  0xd6   :  { %243 = vst [vmem:[#allocation2] sm:$0xff] %v241_v46  ;;  %244 = vst [vmem:[#allocation2 + $0x8] sm:$0xff] %v242_v47 }
  0xd7   :  { %300 = shalt.err (!%p297_p4)
}
  0xd8   :  { %s301_s16 = scalar_lea.hbm %s383_s2, 384 }
  0xd9   :  { %p302_p5 = scmp.ne.s32.totalorder %s383_s2, %s301_s16  ;;  %p305_p6 = scmp.lt.u32.totalorder %s301_s16, %s383_s2 }
  0xdb   :  { %p307_p7 = pnand %p305_p6, %p302_p5 }
  0xdd   :  { %310 = shalt.err (!%p307_p7)
}
  0xde   :  { %s321_s21 = smov 128   ;;  %s322_s22 = smov 8  }
  0xdf   :  { %257 = dma.vmem_to_hbm [thread:$0]  %s252_s1, 384, %s383_s2, [#allocation3], %s321_s21, %s321_s21, %s322_s22  }
  0xe0   :  { %311 = dma.done.wait [#allocation3], 384  }
  0xe1   :  { %312 = vsyncadd [#allocation3], 4294966912 }
  0xe2   :  { %261 = vsyncpa [#allocation3], 1 }

</bundles_post_ra>
